<compile_context>
chip_gen: v7x
topology: tpu7x:2x2x1
jax: 0.10.0
libtpu: 0.0.40
codegen_flags: <defaults>
</compile_context>

<pallas_src>
import math

import jax
import jax.numpy as jnp
from jax.experimental import pallas as pl
from jax.experimental.pallas import tpu as pltpu


def diffadd_kernel(h_ref, x_ref, wh_ref, wi_ref, b_ref, o_ref):
    h = h_ref[...]                                   # (tb, H)
    x = x_ref[...]                                   # (tb, I)
    # Split-weight matmul == matmul on cat([h, x]); both hit the MXU, f32 acc.
    z = jnp.dot(h, wh_ref[...], preferred_element_type=jnp.float32)
    z = z + jnp.dot(x, wi_ref[...], preferred_element_type=jnp.float32)
    z = z + b_ref[...]                               # bias broadcast (1, H)
    hidden_d = jnp.tanh(z)                           # EUP
    delt = x[:, -1:]                                 # (tb, 1) last input feature, in-tile
    o_ref[...] = h + hidden_d * delt                 # delt broadcast over lanes


def diffadd_cell_forward(inp, hidden, w_h, w_i, bias, *, batch_tile=128):
    """inp: (B, I), hidden: (B, H), w_h: (H, H), w_i: (I, H), bias: (H,).

    w_h / w_i are the rows of the PyTorch Linear weight^T corresponding to the
    `hidden` and `input` halves of the concatenated feature axis.
    """
    B, I = inp.shape
    _, H = hidden.shape
    assert w_h.shape == (H, H) and w_i.shape == (I, H) and bias.shape == (H,)

    bias2d = bias.reshape(1, H)
    tb = min(B, batch_tile)
    grid = (pl.cdiv(B, tb),)

    return pl.pallas_call(
        diffadd_kernel,
        out_shape=jax.ShapeDtypeStruct((B, H), jnp.float32),
        grid=grid,
        in_specs=[
            pl.BlockSpec((tb, H), lambda i: (i, 0)),   # hidden   (batch-tiled)
            pl.BlockSpec((tb, I), lambda i: (i, 0)),   # input    (batch-tiled)
            pl.BlockSpec((H, H), lambda i: (0, 0)),    # W_h      (resident)
            pl.BlockSpec((I, H), lambda i: (0, 0)),    # W_i      (resident)
            pl.BlockSpec((1, H), lambda i: (0, 0)),    # bias     (resident)
        ],
        out_specs=pl.BlockSpec((tb, H), lambda i: (i, 0)),
        compiler_params=pltpu.CompilerParams(
            dimension_semantics=("parallel",)),
    )(hidden, inp, w_h, w_i, bias2d)


if __name__ == "__main__":
    B, I, H = 2, 4, 32  # batch, input_size, hidden_size

    key = jax.random.PRNGKey(0)
    k_in, k_h, k_w, k_b = jax.random.split(key, 4)

    # reset_parameters(): uniform(-std, std), std = 1/sqrt(hidden_size).
    std = 1.0 / math.sqrt(H)
    # PyTorch nn.Linear weight is (H, H+I); weight_t = W^T is (H+I, H).
    weight_t = jax.random.uniform(k_w, (H + I, H), jnp.float32, -std, std)
    bias = jax.random.uniform(k_b, (H,), jnp.float32, -std, std)

    # One-time parameter split (done at setup, not per call):
    # concat order is [hidden, input], so first H rows multiply hidden.
    w_h = weight_t[:H]   # (H, H)
    w_i = weight_t[H:]   # (I, H)

    inp = jax.random.normal(k_in, (B, I), jnp.float32)
    hidden = jax.random.normal(k_h, (B, H), jnp.float32)

    # Pure-JAX reference (same math, no Pallas).
    xcat = jnp.concatenate([hidden, inp], axis=1)
    ref = hidden + jnp.tanh(xcat @ weight_t + bias) * inp[:, -1:]

    out = diffadd_cell_forward(inp, hidden, w_h, w_i, bias)
    jax.block_until_ready(out)

    assert jnp.allclose(out, ref, atol=1e-5, rtol=1e-5), "mismatch vs reference"
    print("KERNEL_OK")
</pallas_src>

<mosaic_0001>
module attributes {stable_mosaic.version = 11 : i64} {
  func.func @diffadd_kernel(%arg0: i32, %arg1: memref<2x32xf32, #tpu.memory_space<vmem>>, %arg2: memref<2x4xf32, #tpu.memory_space<vmem>>, %arg3: memref<32x32xf32, #tpu.memory_space<vmem>>, %arg4: memref<4x32xf32, #tpu.memory_space<vmem>>, %arg5: memref<1x32xf32, #tpu.memory_space<vmem>>, %arg6: memref<2x32xf32, #tpu.memory_space<vmem>>) attributes {dimension_semantics = [#tpu.dimension_semantics<parallel>], iteration_bounds = array<i64: 1>, scalar_prefetch = 0 : i64, scratch_operands = 0 : i64, tpu.core_type = #tpu.core_type<tc>, window_params = [{transform_indices = @transform_0, window_bounds = array<i64: 2, 32>}, {transform_indices = @transform_1, window_bounds = array<i64: 2, 4>}, {pipeline_mode = #tpu.pipeline_mode<synchronous>, transform_indices = @transform_2, window_bounds = array<i64: 32, 32>}, {pipeline_mode = #tpu.pipeline_mode<synchronous>, transform_indices = @transform_3, window_bounds = array<i64: 4, 32>}, {pipeline_mode = #tpu.pipeline_mode<synchronous>, transform_indices = @transform_4, window_bounds = array<i64: 1, 32>}, {transform_indices = @transform_5, window_bounds = array<i64: 2, 32>}]} {
    %c0 = arith.constant 0 : index
    %c0_0 = arith.constant 0 : index
    %0 = vector.load %arg1[%c0, %c0_0] : memref<2x32xf32, #tpu.memory_space<vmem>>, vector<2x32xf32>
    %c0_1 = arith.constant 0 : index
    %c0_2 = arith.constant 0 : index
    %1 = vector.load %arg2[%c0_1, %c0_2] : memref<2x4xf32, #tpu.memory_space<vmem>>, vector<2x4xf32>
    %c0_3 = arith.constant 0 : index
    %c0_4 = arith.constant 0 : index
    %2 = vector.load %arg3[%c0_3, %c0_4] : memref<32x32xf32, #tpu.memory_space<vmem>>, vector<32x32xf32>
    %cst = arith.constant dense<0.000000e+00> : vector<2x32xf32>
    %3 = tpu.matmul %0, %2, %cst {dimension_numbers = #tpu.dot_dimension_numbers<[1], [0], [0], [1], [0, 0, 1, 1], [], []>} : vector<2x32xf32>, vector<32x32xf32>, vector<2x32xf32> -> vector<2x32xf32>
    %c0_5 = arith.constant 0 : index
    %c0_6 = arith.constant 0 : index
    %4 = vector.load %arg4[%c0_5, %c0_6] : memref<4x32xf32, #tpu.memory_space<vmem>>, vector<4x32xf32>
    %cst_7 = arith.constant dense<0.000000e+00> : vector<2x32xf32>
    %5 = tpu.matmul %1, %4, %cst_7 {dimension_numbers = #tpu.dot_dimension_numbers<[1], [0], [0], [1], [0, 0, 1, 1], [], []>} : vector<2x4xf32>, vector<4x32xf32>, vector<2x32xf32> -> vector<2x32xf32>
    %6 = arith.addf %3, %5 : vector<2x32xf32>
    %c0_8 = arith.constant 0 : index
    %c0_9 = arith.constant 0 : index
    %7 = vector.load %arg5[%c0_8, %c0_9] : memref<1x32xf32, #tpu.memory_space<vmem>>, vector<1x32xf32>
    %8 = vector.broadcast %7 : vector<1x32xf32> to vector<2x32xf32>
    %9 = arith.addf %6, %8 : vector<2x32xf32>
    %10 = math.tanh %9 : vector<2x32xf32>
    %11 = vector.extract_strided_slice %1 {offsets = [0, 3], sizes = [2, 1], strides = [1, 1]} : vector<2x4xf32> to vector<2x1xf32>
    %12 = vector.broadcast %11 : vector<2x1xf32> to vector<2x32xf32>
    %13 = arith.mulf %10, %12 : vector<2x32xf32>
    %14 = arith.addf %0, %13 : vector<2x32xf32>
    %c0_10 = arith.constant 0 : index
    %c0_11 = arith.constant 0 : index
    %15 = vector.load %arg6[%c0_10, %c0_11] : memref<2x32xf32, #tpu.memory_space<vmem>>, vector<2x32xf32>
    tpu.vector_store %arg6[%c0_10, %c0_11], %14 {strides = array<i32>} : memref<2x32xf32, #tpu.memory_space<vmem>>, vector<2x32xf32>,
    return
  }
  func.func @transform_0(%arg0: i32) -> (i32, i32) {
    %c0_i32 = arith.constant 0 : i32
    %c0_i32_0 = arith.constant 0 : i32
    return %arg0, %c0_i32 : i32, i32
  }
  func.func @transform_1(%arg0: i32) -> (i32, i32) {
    %c0_i32 = arith.constant 0 : i32
    %c0_i32_0 = arith.constant 0 : i32
    return %arg0, %c0_i32 : i32, i32
  }
  func.func @transform_2(%arg0: i32) -> (i32, i32) {
    %c0_i32 = arith.constant 0 : i32
    %c0_i32_0 = arith.constant 0 : i32
    %c0_i32_1 = arith.constant 0 : i32
    return %c0_i32, %c0_i32_0 : i32, i32
  }
  func.func @transform_3(%arg0: i32) -> (i32, i32) {
    %c0_i32 = arith.constant 0 : i32
    %c0_i32_0 = arith.constant 0 : i32
    %c0_i32_1 = arith.constant 0 : i32
    return %c0_i32, %c0_i32_0 : i32, i32
  }
  func.func @transform_4(%arg0: i32) -> (i32, i32) {
    %c0_i32 = arith.constant 0 : i32
    %c0_i32_0 = arith.constant 0 : i32
    %c0_i32_1 = arith.constant 0 : i32
    return %c0_i32, %c0_i32_0 : i32, i32
  }
  func.func @transform_5(%arg0: i32) -> (i32, i32) {
    %c0_i32 = arith.constant 0 : i32
    %c0_i32_0 = arith.constant 0 : i32
    return %arg0, %c0_i32 : i32, i32
  }
}

</mosaic_0001>

<bundles_post_ra>
// kernel: tpu_custom_call.1
= control target key start
LH: loop header
LB: loop body
LE: loop exit
PB: predicated region body
PF: predicated region fallthrough
CT: control target
= control target key end

     0   :  { %10 = vsyncpa [#allocation3], 0  ;;  %s447_s0 = inlined_call_operand.hbm [shape: f32[2,32], index: 0, kind: input, shape index: {}]   ;;  %s448_s1 = inlined_call_operand.vmem [shape: f32[2,4], index: 1, kind: input, shape index: {}]   ;;  %s449_s2 = inlined_call_operand.hbm [shape: f32[32,32], index: 2, kind: input, shape index: {}]   ;;  %s450_s3 = inlined_call_operand.vmem [shape: f32[4,32], index: 3, kind: input, shape index: {}]   ;;  %s451_s4 = inlined_call_operand.vmem [shape: f32[1,32], index: 4, kind: input, shape index: {}]   ;;  %s452_s5 = inlined_call_operand.hbm [shape: f32[2,32], index: 5, kind: output, shape index: {}]  }
   0x1   :  { %11 = vsyncpa [#allocation6], 0 }
   0x2   :  { %12 = vsyncpa [#allocation4], 0  ;;  %s356_s18 = smov [#allocation2]   ;;  %s357_s20 = smov [#allocation5]  }
   0x3   :  { %s19_s19 = sshll.u32 %s356_s18, 4  ;;  %s30_s21 = sshll.u32 %s357_s20, 4  ;;  %s20_s19 = int_to_ptr.vmem [resolvable:$true] %s19_s19  ;;  %s395_s21 = int_to_ptr.vmem [resolvable:$true] %s30_s21 }
   0x4   :  { %s284_s24 = scalar_lea.hbm %s447_s0, 32 }
   0x5   :  { %p285_p0 = scmp.ne.s32.totalorder %s447_s0, %s284_s24  ;;  %p288_p1 = scmp.lt.u32.totalorder %s284_s24, %s447_s0 }
   0x7   :  { %p290_p2 = pnand %p288_p1, %p285_p0 }
   0x9   :  { %293 = shalt.err (!%p290_p2)
}
   0xa   :  { %s294_s29 = scalar_lea.vmem %s20_s19, 32  ;;  %p299_p4 = scmp.lt.s32.totalorder %s20_s19, %s20_s19 }
   0xb   :  { %p295_p3 = scmp.ne.s32.totalorder %s20_s19, %s294_s29  ;;  %p300_p5 = scmp.lt.s32.totalorder %s294_s29, %s294_s29 }
   0xd   :  { %p301_p6 = por %p300_p5, %p299_p4 }
   0xf   :  { %p302_p7 = pnand %p301_p6, %p295_p3 }
  0x11   :  { %305 = shalt.err (!%p302_p7)
}
  0x12   :  { %22 = dma.hbm_to_vmem [thread:$0]  %s447_s0, 32, %s20_s19, [#allocation3]  }
  0x13   :  { %s306_s9 = scalar_lea.hbm %s449_s2, 512 }
  0x14   :  { %p307_p8 = scmp.ne.s32.totalorder %s449_s2, %s306_s9  ;;  %p310_p9 = scmp.lt.u32.totalorder %s306_s9, %s449_s2 }
  0x16   :  { %p312_p10 = pnand %p310_p9, %p307_p8 }
  0x18   :  { %315 = shalt.err (!%p312_p10)
}
  0x19   :  { %s316_s14 = scalar_lea.vmem %s395_s21, 512  ;;  %p321_p12 = scmp.lt.s32.totalorder %s395_s21, %s395_s21 }
  0x1a   :  { %p317_p11 = scmp.ne.s32.totalorder %s395_s21, %s316_s14  ;;  %p322_p13 = scmp.lt.s32.totalorder %s316_s14, %s316_s14 }
  0x1c   :  { %p323_p0 = por %p322_p13, %p321_p12 }
  0x1e   :  { %p324_p1 = pnand %p323_p0, %p317_p11 }
  0x20   :  { %327 = shalt.err (!%p324_p1)
}
  0x21   :  { %s358_s0 = smov 128   ;;  %s359_s15 = smov 8  }
  0x22   :  { %36 = dma.hbm_to_vmem [thread:$0]  %s449_s2, 512, %s395_s21, [#allocation6], %s358_s0, %s358_s0, %s359_s15  }
  0x23   :  { %350 = dma.done.wait [#allocation3], 32  }
  0x24   :  { %351 = vsyncadd [#allocation3], 4294967264 }
  0x25   :  { %352 = dma.done.wait [#allocation6], 512  }
  0x26   :  { %353 = vsyncadd [#allocation6], 4294966784  ;;  %v360_v0 = vmov 0.0|0.0   ;;  %v361_v1 = vmov 0.0   ;;  %vm362_vm0 = vmmov 0   ;;  %v363_v2 = vmov 3  }
  0x27   :  { %266 = vmatprep.subr.bf16.mxu1 %v360_v0  ;;  %250 = vmatprep.subr.mxu0 %v361_v1  ;;  %vm58_vm1 = vcmask 1043456   ;;  %v49_v3 = vld [vmem:[#allocation5] sm:$0xff]  ;;  %v50_v4 = vld [vmem:[#allocation5 + $0x8] sm:$0xff]  ;;  %v51_v5 = vld [vmem:[#allocation5 + $0x10] sm:$0xff]  ;;  %vm54_vm2 = vcmask 31744   ;;  %vm132_vm3 = vcmask 261120  }
  0x28   :  { %252 = vmatprep.mubr.msk.f32.mxu0 %vm362_vm0, %v361_v1  ;;  %263 = vmatprep.mubr.msk.f32.mxu1 %vm362_vm0, %v361_v1  ;;  %v267_v6 = vpack.c.bf16 %v50_v4, %v49_v3  ;;  %v52_v7 = vld [vmem:[#allocation5 + $0x18] sm:$0xff]  ;;  %v48_v9 = vld [vmem:[%s448_s1] sm:$0x3]  ;;  %s364_s1 = smov [#allocation7]   ;;  %vm221_vm4 = vcmask 254976  }
  0x29   :  { %281 = vset.pattern.permute.xlu0 %v363_v2  ;;  %v53_v8 = vld [vmem:[%s450_s3] sm:$0xf]  ;;  %v270_v10 = vpack.c.bf16 %v52_v7, %v51_v5  ;;  %v47_v11 = vld [vmem:[#allocation2] sm:$0x3]  ;;  %s229_s3 = sshll.u32 %s364_s1, 4  ;;  %s230_s3 = int_to_ptr.vmem [resolvable:$true] %s229_s3 }
  0x2a   :  { %251 = vmatpush3.msk.msra.mxu0 %vm58_vm1, %v53_v8  ;;  %216 = vperm.xlu0 %281, %v48_v9   ;;  %v242_v15 = vld [vmem:[%s451_s4] ss:$0 sm:$0xff]  ;;  %s328_s23 = scalar_lea.vmem %s230_s3, 32  ;;  %p333_p3 = scmp.lt.s32.totalorder %s230_s3, %s230_s3 }
  0x2b   :  { %268 = vmatpush3.bf16.msra.mxu1 %v267_v6  ;;  %253 = vmatmul.mubr.msk.f32.vlgmr.msra.gmra.mrb[0].mxu0 %vm54_vm2, %v48_v9  ;;  %p329_p2 = scmp.ne.s32.totalorder %s230_s3, %s328_s23  ;;  %p334_p4 = scmp.lt.s32.totalorder %s328_s23, %s328_s23 }
  0x2c   :  { %269 = vmatprep.subr.bf16.mxu1 %v360_v0 }
  0x2d   :  { %p335_p5 = por %p334_p4, %p333_p3 }
  0x2f   :  { %271 = vmatpush3.bf16.msra.mxu1 %v270_v10  ;;  %p336_p6 = pnand %p335_p5, %p329_p2 }
  0x32   :  { %264 = vmatmul.mubr.msk.f32.vlgmr.msra.gmra.mrb[0].mxu1 %vm132_vm3, %v47_v11 }
  0xa9   :  { %v217_v19 = vpop.permute.xlu0 %216 }
  0xfe   :  { %v128_v12 = vpop.f32.mrb[0].mxu0 }
  0xff   :  { %v254_v13 = vpop.f32.mrb[1].mxu0 }
 0x105   :  { %v202_v14 = vpop.f32.mrb[0].mxu1 }
 0x106   :  { %v203_v16 = vadd.f32 %v202_v14, %v128_v12  ;;  %v265_v17 = vpop.f32.mrb[1].mxu1 }
 0x108   :  { %v213_v18 = vadd.f32 %v242_v15, %v203_v16 }
 0x10a   :  { %282 = vtanh.f32 %v213_v18 }
 0x114   :  { %v283_v20 = vpop.eup %282 }
 0x115   :  { %v219_v21 = vmul.f32 %v283_v20, %v217_v19 }
 0x117   :  { %v220_v22 = vadd.f32 %v219_v21, %v47_v11 }
 0x119   :  { %222 = vst.msk [vmem:[#allocation7] sm:$0x3] %vm221_vm4, %v220_v22 }
 0x11a   :  { %339 = shalt.err (!%p336_p6)
}
 0x11b   :  { %s340_s25 = scalar_lea.hbm %s452_s5, 32 }
 0x11c   :  { %p341_p7 = scmp.ne.s32.totalorder %s452_s5, %s340_s25  ;;  %p344_p8 = scmp.lt.u32.totalorder %s340_s25, %s452_s5 }
 0x11e   :  { %p346_p9 = pnand %p344_p8, %p341_p7 }
 0x120   :  { %349 = shalt.err (!%p346_p9)
}
 0x121   :  { %232 = dma.vmem_to_hbm [thread:$0]  %s230_s3, 32, %s452_s5, [#allocation4]  }
 0x122   :  { %354 = dma.done.wait [#allocation4], 32  }
 0x123   :  { %355 = vsyncadd [#allocation4], 4294967264 }
 0x124   :  { %236 = vsyncpa [#allocation3], 1 }
 0x125   :  { %237 = vsyncpa [#allocation6], 1 }
 0x126   :  { %238 = vsyncpa [#allocation4], 1 }

</bundles_post_ra>
